<compile_context>
chip_gen: v5e
topology: v5e:2x2
jax: 0.10.0
libtpu: 0.0.40
codegen_flags: <defaults>
</compile_context>

<pallas_src>
import functools

import numpy as np

import jax
import jax.numpy as jnp
from jax.experimental import pallas as pl
from jax.experimental.pallas import tpu as pltpu


# Double-buffered working-set budget: fits v5e's 16 MiB scoped-VMEM default
# (v6e / v7x default to 32 MiB scoped), leaving headroom for compiler scratch.
_VMEM_WORKING_SET_BUDGET = 12 * 1024 * 1024


def make_freq_bands(max_freq_log2, n_freqs, log_sampling=True):
    """Matches Embedder.__init__ freq band construction (python floats)."""
    if log_sampling:
        bands = 2.0 ** np.linspace(0.0, max_freq_log2, n_freqs)
    else:
        bands = np.linspace(2.0 ** 0.0, 2.0 ** max_freq_log2, n_freqs)
    return [float(f) for f in bands]


def _round_up(x, m):
    return ((x + m - 1) // m) * m


def _embedder_kernel(x_ref, o_ref, *, freq_bands, include_input):
    # x_ref: (tile_R, C)      lane-dense flat view of the coordinates
    # o_ref: (P, tile_R, C)   part p is a contiguous slab -> dense stores
    x = x_ref[...]
    p = 0
    if include_input:
        o_ref[p] = x.astype(o_ref.dtype)
        p += 1
    for f in freq_bands:
        xf = x * jnp.float32(f)
        o_ref[p] = jnp.sin(xf).astype(o_ref.dtype)
        o_ref[p + 1] = jnp.cos(xf).astype(o_ref.dtype)
        p += 2
    # TODO(synk): on v7x (3.2 TB/s HBM) the EUP can become the binding slot;
    # for log-sampled bands a double-angle recurrence (sin2a=2*s*c,
    # cos2a=c^2-s^2) would cut transcendentals from 2*N_freqs to 2 per element
    # at the cost of bit-exactness; skipped (HBM/vst-bound on v5e/v6e).


def embedder_forward_stacked(x, *, max_freq_log2, n_freqs, log_sampling=True,
                             include_input=True, lane_width=512,
                             block_rows=512, out_dtype=None):
    """Fast-path layout: returns shape (n_parts, *x.shape[:-1], input_dim).

    Part order is [x (if include_input), sin(f0*x), cos(f0*x), sin(f1*x), ...].
    This is the kernel's native part-major layout and involves NO extra HBM
    transpose.  A consumer Linear layer can permute its weight rows once at
    init to consume this directly instead of the interleaved PyTorch order.
    """
    input_dim = x.shape[-1]
    in_dtype = jnp.dtype(x.dtype)
    out_dtype = jnp.dtype(out_dtype) if out_dtype is not None else in_dtype

    freq_bands = make_freq_bands(max_freq_log2, n_freqs, log_sampling)
    n_parts = (1 if include_input else 0) + 2 * n_freqs

    lead_shape = x.shape[:-1]
    n_pts = int(np.prod(lead_shape)) if lead_shape else 1
    flat_len = n_pts * input_dim

    # Lane-dense flat view (rows, C), C a multiple of 128.  Prefer a C that
    # divides flat_len so no padding copy of the input is needed at all
    # (e.g. n_pts % 128 == 0 with D=3 -> C=384 divides exactly).
    c_width = max(128, min(_round_up(int(lane_width), 128),
                           _round_up(flat_len, 128)))
    if flat_len > c_width and flat_len % c_width != 0:
        for cand in range(c_width, 127, -128):
            if flat_len % cand == 0:
                c_width = cand
                break

    x_flat = x.reshape(flat_len)
    rem = flat_len % c_width
    if rem:
        # Pad only up to the next lane-row (needed to form the 2-D view); for
        # typical NeRF batch sizes this branch is never taken.
        x_flat = jnp.pad(x_flat, (0, c_width - rem))
    n_rows = x_flat.shape[0] // c_width
    x2d = x_flat.reshape(n_rows, c_width)

    # Sublane granularity for the row tile (packed dtypes need 16/32 rows).
    sub = max(32 // in_dtype.itemsize, 32 // out_dtype.itemsize, 8)

    # dtype-aware double-buffered working set (input block + P output slabs).
    bytes_per_row = 2 * c_width * (in_dtype.itemsize +
                                   n_parts * out_dtype.itemsize)
    vmem_rows = max(sub, (_VMEM_WORKING_SET_BUDGET // bytes_per_row)
                    // sub * sub)
    # Keep >= ~4 grid steps so ("parallel",) can shard over v7x's 2 TCs.
    mc_rows = max(sub, _round_up(pl.cdiv(n_rows, 4), sub))
    req_rows = max(sub, _round_up(int(block_rows), sub))

    if n_rows <= sub:
        tile_rows = n_rows          # block == full row dim (always legal)
    else:
        tile_rows = min(vmem_rows, req_rows, mc_rows)

    grid = (pl.cdiv(n_rows, tile_rows),)

    kernel = functools.partial(_embedder_kernel,
                               freq_bands=freq_bands,
                               include_input=include_input)

    out_stacked = pl.pallas_call(
        kernel,
        out_shape=jax.ShapeDtypeStruct((n_parts, n_rows, c_width), out_dtype),
        grid_spec=pltpu.PrefetchScalarGridSpec(
            num_scalar_prefetch=0,
            grid=grid,
            in_specs=[pl.BlockSpec((tile_rows, c_width), lambda i: (i, 0))],
            out_specs=pl.BlockSpec((n_parts, tile_rows, c_width),
                                   lambda i: (0, i, 0)),
        ),
        compiler_params=pltpu.CompilerParams(
            dimension_semantics=("parallel",)),
    )(x2d)

    out = out_stacked.reshape(n_parts, n_rows * c_width)
    if n_rows * c_width != flat_len:
        out = out[:, :flat_len]
    return out.reshape(n_parts, *lead_shape, input_dim)


def embedder_forward(x, *, max_freq_log2, n_freqs, log_sampling=True,
                     include_input=True, lane_width=512, block_rows=512,
                     out_dtype=None):
    """x: [..., input_dim] -> [..., out_dim], matching PyTorch Embedder.forward.

    The concat order [x, sin(f0 x), cos(f0 x), sin(f1 x), ...] requires one
    (part, dim) interleave; it is done as a single XLA transpose on the
    stacked kernel output.  Performance-sensitive consumers should use
    `embedder_forward_stacked` and permute their first Linear's weights
    instead (saves ~2x HBM traffic on the (1+2F)x-amplified output).
    """
    input_dim = x.shape[-1]
    n_parts = (1 if include_input else 0) + 2 * n_freqs
    lead_shape = x.shape[:-1]

    stacked = embedder_forward_stacked(
        x, max_freq_log2=max_freq_log2, n_freqs=n_freqs,
        log_sampling=log_sampling, include_input=include_input,
        lane_width=lane_width, block_rows=block_rows, out_dtype=out_dtype)

    out = jnp.moveaxis(stacked, 0, -2)          # (*lead, P, D)
    return out.reshape(*lead_shape, n_parts * input_dim)


def embedder_reference(x, *, max_freq_log2, n_freqs, log_sampling=True,
                       include_input=True):
    """Pure-JAX reference matching the PyTorch forward exactly."""
    freq_bands = make_freq_bands(max_freq_log2, n_freqs, log_sampling)
    parts = []
    if include_input:
        parts.append(x)
    for f in freq_bands:
        parts.append(jnp.sin(x * f))
        parts.append(jnp.cos(x * f))
    return jnp.concatenate(parts, axis=-1)


if __name__ == "__main__":
    input_dim = 3
    max_freq_log2 = 3
    n_freqs = 4

    key = jax.random.PRNGKey(0)
    k1, k2, k3 = jax.random.split(key, 3)

    # Test 1: tiny shape, single grid step. out_dim = 3 + 3*4*2 = 27.
    x = jax.random.normal(k1, (2, 8, input_dim), dtype=jnp.float32)
    out = embedder_forward(x, max_freq_log2=max_freq_log2, n_freqs=n_freqs,
                           log_sampling=True, include_input=True)
    out = jax.block_until_ready(out)
    ref = embedder_reference(x, max_freq_log2=max_freq_log2, n_freqs=n_freqs,
                             log_sampling=True, include_input=True)
    assert out.shape == (2, 8, input_dim + input_dim * n_freqs * 2), out.shape
    np.testing.assert_allclose(np.asarray(out), np.asarray(ref),
                               rtol=1e-5, atol=1e-5)

    # Test 2: multi-block grid with a ragged last block (12 rows, tile 8),
    # no input pad copy, include_input=False / linear-sampling path.
    x2 = jax.random.normal(k2, (2, 256, input_dim), dtype=jnp.float32)
    out2 = embedder_forward(x2, max_freq_log2=max_freq_log2, n_freqs=n_freqs,
                            log_sampling=False, include_input=False,
                            lane_width=128, block_rows=8)
    out2 = jax.block_until_ready(out2)
    ref2 = embedder_reference(x2, max_freq_log2=max_freq_log2, n_freqs=n_freqs,
                              log_sampling=False, include_input=False)
    assert out2.shape == (2, 256, input_dim * n_freqs * 2), out2.shape
    np.testing.assert_allclose(np.asarray(out2), np.asarray(ref2),
                               rtol=1e-5, atol=1e-5)

    # Test 3: bf16-output fast path + stacked (part-major) layout contract.
    x3 = jax.random.normal(k3, (4, 512, input_dim), dtype=jnp.float32)
    stacked3 = embedder_forward_stacked(
        x3, max_freq_log2=max_freq_log2, n_freqs=n_freqs,
        log_sampling=True, include_input=True, out_dtype=jnp.bfloat16)
    stacked3 = jax.block_until_ready(stacked3)
    assert stacked3.shape == (1 + 2 * n_freqs, 4, 512, input_dim), stacked3.shape
    inter3 = jnp.moveaxis(stacked3, 0, -2).reshape(4, 512, -1)
    ref3 = embedder_reference(x3, max_freq_log2=max_freq_log2, n_freqs=n_freqs,
                              log_sampling=True, include_input=True)
    np.testing.assert_allclose(np.asarray(inter3.astype(jnp.float32)),
                               np.asarray(ref3), rtol=2e-2, atol=2e-2)

    print("KERNEL_OK")
</pallas_src>

<mosaic_0001>
module attributes {stable_mosaic.version = 11 : i64} {
  func.func @_embedder_kernel(%arg0: i32, %arg1: memref<1x128xf32, #tpu.memory_space<vmem>>, %arg2: memref<9x1x128xf32, #tpu.memory_space<vmem>>) attributes {dimension_semantics = [#tpu.dimension_semantics<parallel>], iteration_bounds = array<i64: 1>, scalar_prefetch = 0 : i64, scratch_operands = 0 : i64, tpu.core_type = #tpu.core_type<tc>, window_params = [{transform_indices = @transform_0, window_bounds = array<i64: 1, 128>}, {transform_indices = @transform_1, window_bounds = array<i64: 9, 1, 128>}]} {
    %c0 = arith.constant 0 : index
    %c0_0 = arith.constant 0 : index
    %0 = vector.load %arg1[%c0, %c0_0] : memref<1x128xf32, #tpu.memory_space<vmem>>, vector<1x128xf32>
    %c0_1 = arith.constant 0 : index
    %c0_2 = arith.constant 0 : index
    %c0_3 = arith.constant 0 : index
    %1 = vector.load %arg2[%c0_1, %c0_2, %c0_3] : memref<9x1x128xf32, #tpu.memory_space<vmem>>, vector<1x1x128xf32>
    %2 = vector.shape_cast %1 : vector<1x1x128xf32> to vector<1x128xf32>
    %3 = vector.shape_cast %0 : vector<1x128xf32> to vector<1x1x128xf32>
    tpu.vector_store %arg2[%c0_1, %c0_2, %c0_3], %3 {strides = array<i32>} : memref<9x1x128xf32, #tpu.memory_space<vmem>>, vector<1x1x128xf32>,
    %cst = arith.constant 1.000000e+00 : f32
    %4 = vector.broadcast %cst : f32 to vector<1x128xf32>
    %5 = arith.mulf %0, %4 : vector<1x128xf32>
    %6 = math.sin %5 : vector<1x128xf32>
    %c1 = arith.constant 1 : index
    %c0_4 = arith.constant 0 : index
    %c0_5 = arith.constant 0 : index
    %7 = vector.load %arg2[%c1, %c0_4, %c0_5] : memref<9x1x128xf32, #tpu.memory_space<vmem>>, vector<1x1x128xf32>
    %8 = vector.shape_cast %7 : vector<1x1x128xf32> to vector<1x128xf32>
    %9 = vector.shape_cast %6 : vector<1x128xf32> to vector<1x1x128xf32>
    tpu.vector_store %arg2[%c1, %c0_4, %c0_5], %9 {strides = array<i32>} : memref<9x1x128xf32, #tpu.memory_space<vmem>>, vector<1x1x128xf32>,
    %10 = math.cos %5 : vector<1x128xf32>
    %c2 = arith.constant 2 : index
    %c0_6 = arith.constant 0 : index
    %c0_7 = arith.constant 0 : index
    %11 = vector.load %arg2[%c2, %c0_6, %c0_7] : memref<9x1x128xf32, #tpu.memory_space<vmem>>, vector<1x1x128xf32>
    %12 = vector.shape_cast %11 : vector<1x1x128xf32> to vector<1x128xf32>
    %13 = vector.shape_cast %10 : vector<1x128xf32> to vector<1x1x128xf32>
    tpu.vector_store %arg2[%c2, %c0_6, %c0_7], %13 {strides = array<i32>} : memref<9x1x128xf32, #tpu.memory_space<vmem>>, vector<1x1x128xf32>,
    %cst_8 = arith.constant 2.000000e+00 : f32
    %14 = vector.broadcast %cst_8 : f32 to vector<1x128xf32>
    %15 = arith.mulf %0, %14 : vector<1x128xf32>
    %16 = math.sin %15 : vector<1x128xf32>
    %c3 = arith.constant 3 : index
    %c0_9 = arith.constant 0 : index
    %c0_10 = arith.constant 0 : index
    %17 = vector.load %arg2[%c3, %c0_9, %c0_10] : memref<9x1x128xf32, #tpu.memory_space<vmem>>, vector<1x1x128xf32>
    %18 = vector.shape_cast %17 : vector<1x1x128xf32> to vector<1x128xf32>
    %19 = vector.shape_cast %16 : vector<1x128xf32> to vector<1x1x128xf32>
    tpu.vector_store %arg2[%c3, %c0_9, %c0_10], %19 {strides = array<i32>} : memref<9x1x128xf32, #tpu.memory_space<vmem>>, vector<1x1x128xf32>,
    %20 = math.cos %15 : vector<1x128xf32>
    %c4 = arith.constant 4 : index
    %c0_11 = arith.constant 0 : index
    %c0_12 = arith.constant 0 : index
    %21 = vector.load %arg2[%c4, %c0_11, %c0_12] : memref<9x1x128xf32, #tpu.memory_space<vmem>>, vector<1x1x128xf32>
    %22 = vector.shape_cast %21 : vector<1x1x128xf32> to vector<1x128xf32>
    %23 = vector.shape_cast %20 : vector<1x128xf32> to vector<1x1x128xf32>
    tpu.vector_store %arg2[%c4, %c0_11, %c0_12], %23 {strides = array<i32>} : memref<9x1x128xf32, #tpu.memory_space<vmem>>, vector<1x1x128xf32>,
    %cst_13 = arith.constant 4.000000e+00 : f32
    %24 = vector.broadcast %cst_13 : f32 to vector<1x128xf32>
    %25 = arith.mulf %0, %24 : vector<1x128xf32>
    %26 = math.sin %25 : vector<1x128xf32>
    %c5 = arith.constant 5 : index
    %c0_14 = arith.constant 0 : index
    %c0_15 = arith.constant 0 : index
    %27 = vector.load %arg2[%c5, %c0_14, %c0_15] : memref<9x1x128xf32, #tpu.memory_space<vmem>>, vector<1x1x128xf32>
    %28 = vector.shape_cast %27 : vector<1x1x128xf32> to vector<1x128xf32>
    %29 = vector.shape_cast %26 : vector<1x128xf32> to vector<1x1x128xf32>
    tpu.vector_store %arg2[%c5, %c0_14, %c0_15], %29 {strides = array<i32>} : memref<9x1x128xf32, #tpu.memory_space<vmem>>, vector<1x1x128xf32>,
    %30 = math.cos %25 : vector<1x128xf32>
    %c6 = arith.constant 6 : index
    %c0_16 = arith.constant 0 : index
    %c0_17 = arith.constant 0 : index
    %31 = vector.load %arg2[%c6, %c0_16, %c0_17] : memref<9x1x128xf32, #tpu.memory_space<vmem>>, vector<1x1x128xf32>
    %32 = vector.shape_cast %31 : vector<1x1x128xf32> to vector<1x128xf32>
    %33 = vector.shape_cast %30 : vector<1x128xf32> to vector<1x1x128xf32>
    tpu.vector_store %arg2[%c6, %c0_16, %c0_17], %33 {strides = array<i32>} : memref<9x1x128xf32, #tpu.memory_space<vmem>>, vector<1x1x128xf32>,
    %cst_18 = arith.constant 8.000000e+00 : f32
    %34 = vector.broadcast %cst_18 : f32 to vector<1x128xf32>
    %35 = arith.mulf %0, %34 : vector<1x128xf32>
    %36 = math.sin %35 : vector<1x128xf32>
    %c7 = arith.constant 7 : index
    %c0_19 = arith.constant 0 : index
    %c0_20 = arith.constant 0 : index
    %37 = vector.load %arg2[%c7, %c0_19, %c0_20] : memref<9x1x128xf32, #tpu.memory_space<vmem>>, vector<1x1x128xf32>
    %38 = vector.shape_cast %37 : vector<1x1x128xf32> to vector<1x128xf32>
    %39 = vector.shape_cast %36 : vector<1x128xf32> to vector<1x1x128xf32>
    tpu.vector_store %arg2[%c7, %c0_19, %c0_20], %39 {strides = array<i32>} : memref<9x1x128xf32, #tpu.memory_space<vmem>>, vector<1x1x128xf32>,
    %40 = math.cos %35 : vector<1x128xf32>
    %c8 = arith.constant 8 : index
    %c0_21 = arith.constant 0 : index
    %c0_22 = arith.constant 0 : index
    %41 = vector.load %arg2[%c8, %c0_21, %c0_22] : memref<9x1x128xf32, #tpu.memory_space<vmem>>, vector<1x1x128xf32>
    %42 = vector.shape_cast %41 : vector<1x1x128xf32> to vector<1x128xf32>
    %43 = vector.shape_cast %40 : vector<1x128xf32> to vector<1x1x128xf32>
    tpu.vector_store %arg2[%c8, %c0_21, %c0_22], %43 {strides = array<i32>} : memref<9x1x128xf32, #tpu.memory_space<vmem>>, vector<1x1x128xf32>,
    return
  }
  func.func @transform_0(%arg0: i32) -> (i32, i32) {
    %c0_i32 = arith.constant 0 : i32
    %c0_i32_0 = arith.constant 0 : i32
    return %arg0, %c0_i32 : i32, i32
  }
  func.func @transform_1(%arg0: i32) -> (i32, i32, i32) {
    %c0_i32 = arith.constant 0 : i32
    %c0_i32_0 = arith.constant 0 : i32
    %c0_i32_1 = arith.constant 0 : i32
    return %c0_i32, %arg0, %c0_i32_0 : i32, i32, i32
  }
}

</mosaic_0001>

<bundles_post_ra>
// kernel: tpu_custom_call.1
= control target key start
LH: loop header
LB: loop body
LE: loop exit
PB: predicated region body
PF: predicated region fallthrough
CT: control target
= control target key end

     0   :  { %6 = vsyncpa [#allocation3], 0  ;;  %s1812_s0 = inlined_call_operand.hbm [shape: f32[1,128], index: 0, kind: input, shape index: {}]   ;;  %s1813_s1 = inlined_call_operand.hbm [shape: f32[9,1,128], index: 1, kind: output, shape index: {}]  }
   0x1   :  { %7 = vsyncpa [#allocation4], 0  ;;  %s13_s8 = sshll.u32 %s1812_s0, 4  ;;  %s1386_s9 = smov [#allocation2]   ;;  %s14_s8 = int_to_ptr.hbm [resolvable:$true] %s13_s8 }
   0x2   :  { %s15_s10 = sshll.u32 %s1386_s9, 4  ;;  %s16_s10 = int_to_ptr.vmem [resolvable:$true] %s15_s10 }
   0x3   :  { %18 = dma.hbm_to_vmem [thread:$0]  %s14_s8, 16, %s16_s10, [#allocation3]  }
   0x4   :  { %1382 = dma.done.wait [#allocation3], 16  }
   0x5   :  { %1383 = vsyncadd [#allocation3], 4294967280  ;;  %v1410_v0 = vld [vmem:[#allocation2] sm:$0x1]  ;;  %v1387_v25 = vmov 683565275  }
   0x6   :  { %24 = vst [vmem:[#allocation5] sm:$0x1] %v1410_v0  ;;  %v25_v1 = vand.u32 2147483647, %v1410_v0  ;;  %v28_v2 = vand.u32 2139095040, %v1410_v0  ;;  %v1416_v3 = vmul.f32 2.0, %v1410_v0 }
   0x7   :  { %v1423_v8 = vmul.f32 4.0, %v1410_v0  ;;  %v1388_v27 = vmov 2475754826   ;;  %v1389_v29 = vmov 2131351028   ;;  %s1394_s0 = smov [#allocation5]  }
   0x8   :  { %v29_v4 = vshrl.u32 %v28_v2, 23  ;;  %v32_v5 = vand.u32 8388607, %v25_v1  ;;  %v339_v6 = vand.u32 2147483647, %v1416_v3  ;;  %v342_v7 = vand.u32 2139095040, %v1416_v3 }
   0x9   :  { %v656_v16 = vand.u32 2139095040, %v1423_v8  ;;  %v1390_v31 = vmov 2102212464   ;;  %v1391_v33 = vmov 920167782   ;;  %s1284_s11 = sshll.u32 %s1394_s0, 4  ;;  %s1285_s11 = int_to_ptr.vmem [resolvable:$true] %s1284_s11 }
   0xa   :  { %v1299_v9 = vadd.s32 4294967169, %v29_v4  ;;  %v33_v10 = vor.u32 8388608, %v32_v5  ;;  %v343_v11 = vshrl.u32 %v342_v7, 23  ;;  %v346_v15 = vand.u32 8388607, %v339_v6  ;;  %s1286_s14 = sshll.u32 %s1813_s1, 4  ;;  %s1287_s14 = int_to_ptr.hbm [resolvable:$true] %s1286_s14 }
   0xb   :  { %v1433_v23 = vshrl.u32 %v656_v16, 23  ;;  %v1392_v40 = vmov 1326507024   ;;  %s1395_s15 = smov 16   ;;  %s1396_s16 = smov 1  }
   0xc   :  { %v35_v12 = vadd.s32 1, %v1299_v9  ;;  %v1425_v13 = vshll.u32 %v33_v10, 8  ;;  %v1305_v14 = vadd.s32 4294967169, %v343_v11  ;;  %v347_v22 = vor.u32 8388608, %v346_v15 }
   0xe   :  { %vm36_vm0 = vcmp.gt.s32.totalorder %v35_v12, 0  ;;  %v349_v18 = vadd.s32 1, %v1305_v14  ;;  %v1431_v21 = vand.u32 65535, %v1425_v13  ;;  %v75_v59 = vshrl.u32 %v1425_v13, 16 }
   0xf   :  { %v37_v17 = vsel %vm36_vm0, %v35_v12, 0  ;;  %v1455_v60 = vshll.u32 %v347_v22, 8 }
  0x10   :  { %v38_v19 = vshrl.u32 %v37_v17, 5  ;;  %v39_v20 = vand.u32 31, %v37_v17  ;;  %vm350_vm2 = vcmp.gt.s32.totalorder %v349_v18, 0 }
  0x11   :  { %v351_v45 = vsel %vm350_vm2, %v349_v18, 0 }
  0x12   :  { %v40_v24 = vsub.s32 32, %v39_v20  ;;  %v42_v26 = vshll.u32 %v1387_v25, %v39_v20  ;;  %v45_v28 = vshll.u32 %v1388_v27, %v39_v20  ;;  %v48_v30 = vshll.u32 %v1389_v29, %v39_v20 }
  0x13   :  { %v51_v32 = vshll.u32 %v1390_v31, %v39_v20  ;;  %v54_v34 = vshll.u32 %v1391_v33, %v39_v20  ;;  %vm57_vm1 = vcmp.lt.s32.totalorder %v38_v19, 1  ;;  %vm58_vm3 = vcmp.lt.s32.totalorder %v38_v19, 2 }
  0x14   :  { %v41_v35 = vshrl.u32 %v1387_v25, %v40_v24  ;;  %v43_v36 = vshrl.u32 %v1388_v27, %v40_v24  ;;  %v46_v37 = vshrl.u32 %v1389_v29, %v40_v24  ;;  %v49_v38 = vshrl.u32 %v1390_v31, %v40_v24 }
  0x15   :  { %v52_v39 = vshrl.u32 %v1391_v33, %v40_v24  ;;  %v55_v41 = vshrl.u32 %v1392_v40, %v40_v24  ;;  %vm60_vm4 = vcmp.lt.s32.totalorder %v38_v19, 4  ;;  %vm59_vm5 = vcmp.lt.s32.totalorder %v38_v19, 3 }
  0x16   :  { %v44_v42 = vor.u32 %v43_v36, %v42_v26  ;;  %v47_v43 = vor.u32 %v46_v37, %v45_v28  ;;  %v50_v44 = vor.u32 %v49_v38, %v48_v30  ;;  %v1446_v48 = vand.u32 31, %v351_v45 }
  0x17   :  { %v53_v46 = vor.u32 %v52_v39, %v51_v32  ;;  %v56_v47 = vor.u32 %v55_v41, %v54_v34  ;;  %v1462_v2 = vshrl.u32 %v351_v45, 5 }
  0x18   :  { %v61_v49 = vsel %vm57_vm1, %v41_v35, %v44_v42  ;;  %v62_v50 = vsel %vm60_vm4, %v50_v44, 2102212464  ;;  %v65_v51 = vsel %vm57_vm1, %v44_v42, %v47_v43  ;;  %v69_v52 = vsel %vm57_vm1, %v47_v43, %v50_v44 }
  0x19   :  { %v63_v53 = vsel %vm59_vm5, %v47_v43, %v62_v50  ;;  %v66_v54 = vsel %vm60_vm4, %v53_v46, 920167782  ;;  %v70_v55 = vsel %vm60_vm4, %v56_v47, 1326507024  ;;  %v1452_v56 = vsub.s32 32, %v1446_v48 }
  0x1a   :  { %v67_v57 = vsel %vm59_vm5, %v50_v44, %v66_v54  ;;  %v71_v58 = vsel %vm59_vm5, %v53_v46, %v70_v55  ;;  %v1458_v61 = vsel %vm58_vm3, %v61_v49, %v63_v53  ;;  %v356_v10 = vshll.u32 %v1387_v25, %v1446_v48 }
  0x1b   :  { %v68_v62 = vsel %vm58_vm3, %v65_v51, %v67_v57  ;;  %v72_v63 = vsel %vm58_vm3, %v69_v52, %v71_v58  ;;  %v357_v11 = vshrl.u32 %v1388_v27, %v1452_v56  ;;  %v359_v12 = vshll.u32 %v1388_v27, %v1446_v48 }
  0x1c   :  { %v76_v4 = vand.u32 65535, %v72_v63  ;;  %v77_v5 = vshrl.u32 %v72_v63, 16  ;;  %v98_v7 = vand.u32 65535, %v68_v62  ;;  %v99_v9 = vshrl.u32 %v68_v62, 16 }
  0x1d   :  { %v360_v14 = vshrl.u32 %v1389_v29, %v1452_v56  ;;  %v362_v18 = vshll.u32 %v1389_v29, %v1446_v48  ;;  %v1478_v41 = vor.u32 %v357_v11, %v356_v10  ;;  %v1393_v42 = vmov 0  }
  0x1e   :  { %v78_v15 = vmul.u32 %v76_v4, %v1431_v21  ;;  %v79_v16 = vmul.u32 %v77_v5, %v1431_v21  ;;  %v80_v17 = vmul.u32 %v76_v4, %v75_v59  ;;  %v81_v19 = vmul.u32 %v77_v5, %v75_v59 }
  0x1f   :  { %v100_v20 = vmul.u32 %v98_v7, %v1431_v21  ;;  %v101_v22 = vmul.u32 %v99_v9, %v1431_v21  ;;  %v102_v24 = vmul.u32 %v98_v7, %v75_v59  ;;  %v103_v32 = vmul.u32 %v99_v9, %v75_v59 }
  0x20   :  { %v82_v26 = vshll.u32 %v79_v16, 16  ;;  %v83_v28 = vshrl.u32 %v79_v16, 16  ;;  %v84_v30 = vshll.u32 %v80_v17, 16  ;;  %v85_v34 = vshrl.u32 %v80_v17, 16 }
  0x21   :  { %v104_v35 = vshll.u32 %v101_v22, 16  ;;  %v105_v36 = vshrl.u32 %v101_v22, 16  ;;  %v106_v37 = vshll.u32 %v102_v24, 16  ;;  %v107_v39 = vshrl.u32 %v102_v24, 16 }
  0x22   :  { %vm86_vm6 = vc.u32 %v78_v15, %v82_v26  ;;  %v88_v38 = vadd.s32 %v82_v26, %v78_v15  ;;  %v363_v21 = vshrl.u32 %v1390_v31, %v1452_v56  ;;  %v365_v47 = vshll.u32 %v1390_v31, %v1446_v48 }
  0x23   :  { %v87_v43 = vsel %vm86_vm6, 1, %v1393_v42  ;;  %vm108_vm7 = vc.u32 %v100_v20, %v104_v35  ;;  %v110_v44 = vadd.s32 %v104_v35, %v100_v20  ;;  %v361_v51 = vor.u32 %v360_v14, %v359_v12 }
  0x24   :  { %v89_v45 = vadd.s32 %v87_v43, %v81_v19  ;;  %vm90_vm8 = vc.u32 %v88_v38, %v84_v30  ;;  %v109_v46 = vsel %vm108_vm7, 1, %v1393_v42  ;;  %v364_v54 = vor.u32 %v363_v21, %v362_v18 }
  0x25   :  { %v91_v49 = vsel %vm90_vm8, 1, %v1393_v42  ;;  %v111_v50 = vadd.s32 %v109_v46, %v103_v32  ;;  %vm112_vm9 = vc.u32 %v110_v44, %v106_v37  ;;  %v366_v55 = vshrl.u32 %v1391_v33, %v1452_v56 }
  0x26   :  { %v93_v52 = vadd.s32 %v91_v49, %v89_v45  ;;  %v113_v53 = vsel %vm112_vm9, 1, %v1393_v42  ;;  %v368_v58 = vshll.u32 %v1391_v33, %v1446_v48  ;;  %v369_v59 = vshrl.u32 %v1392_v40, %v1452_v56 }
  0x27   :  { %v115_v57 = vadd.s32 %v113_v53, %v111_v50  ;;  %vm371_vm10 = vcmp.lt.s32.totalorder %v1462_v2, 1  ;;  %v1495_v63 = vadd.s32 %v110_v44, %v106_v37  ;;  %v367_v4 = vor.u32 %v366_v55, %v365_v47 }
  0x28   :  { %v94_v62 = vadd.s32 %v93_v52, %v83_v28  ;;  %vm373_vm11 = vcmp.lt.s32.totalorder %v1462_v2, 3  ;;  %v370_v7 = vor.u32 %v369_v59, %v368_v58  ;;  %vm372_vm12 = vcmp.lt.s32.totalorder %v1462_v2, 2 }
  0x29   :  { %v116_v5 = vadd.s32 %v115_v57, %v105_v36  ;;  %vm374_vm13 = vcmp.lt.s32.totalorder %v1462_v2, 4  ;;  %v379_v48 = vsel %vm371_vm10, %v1478_v41, %v361_v51  ;;  %v1311_v11 = vadd.s32 4294967169, %v1433_v23 }
  0x2a   :  { %v1500_v9 = vadd.s32 %v94_v62, %v85_v34  ;;  %v380_v10 = vsel %vm374_vm13, %v367_v4, 920167782  ;;  %v388_v15 = vand.u32 65535, %v1455_v60  ;;  %v389_v16 = vshrl.u32 %v1455_v60, 16 }
  0x2b   :  { %v117_v12 = vadd.s32 %v116_v5, %v107_v39  ;;  %v381_v14 = vsel %vm373_vm11, %v364_v54, %v380_v10  ;;  %v118_v17 = vmul.u32 %v1425_v13, %v1458_v61  ;;  %v383_v23 = vsel %vm371_vm10, %v361_v51, %v364_v54 }
  0x2c   :  { %vm120_vm14 = vc.u32 %v1500_v9, %v1495_v63  ;;  %v382_v18 = vsel %vm372_vm12, %v379_v48, %v381_v14  ;;  %v384_v20 = vsel %vm374_vm13, %v370_v7, 1326507024  ;;  %v355_v26 = vshrl.u32 %v1387_v25, %v1452_v56 }
  0x2d   :  { %v121_v19 = vadd.s32 1, %v117_v12  ;;  %v412_v22 = vand.u32 65535, %v382_v18  ;;  %v413_v24 = vshrl.u32 %v382_v18, 16  ;;  %v385_v13 = vsel %vm373_vm11, %v367_v4, %v384_v20 }
  0x2e   :  { %v386_v28 = vsel %vm372_vm12, %v383_v23, %v385_v13  ;;  %v653_v39 = vand.u32 2147483647, %v1423_v8  ;;  %v663_v43 = vadd.s32 1, %v1311_v11  ;;  %v376_v56 = vsel %vm374_vm13, %v364_v54, 2102212464 }
  0x2f   :  { %v122_v61 = vsel %vm120_vm14, %v121_v19, %v117_v12  ;;  %v414_v30 = vmul.u32 %v412_v22, %v388_v15  ;;  %v415_v32 = vmul.u32 %v413_v24, %v388_v15  ;;  %v390_v35 = vand.u32 65535, %v386_v28 }
  0x30   :  { %v123_v34 = vadd.s32 %v122_v61, %v118_v17  ;;  %v391_v36 = vshrl.u32 %v386_v28, 16  ;;  %v416_v37 = vmul.u32 %v412_v22, %v389_v16  ;;  %v375_v46 = vsel %vm371_vm10, %v355_v26, %v1478_v41 }
  0x31   :  { %v418_v38 = vshll.u32 %v415_v32, 16  ;;  %v392_v21 = vmul.u32 %v390_v35, %v388_v15  ;;  %v394_v47 = vmul.u32 %v390_v35, %v389_v16  ;;  %v417_v49 = vmul.u32 %v413_v24, %v389_v16 }
  0x32   :  { %v124_v44 = vadd.s32 536870912, %v123_v34  ;;  %v393_v45 = vmul.u32 %v391_v36, %v388_v15  ;;  %v420_v50 = vshll.u32 %v416_v37, 16  ;;  %v395_v53 = vmul.u32 %v391_v36, %v389_v16 }
  0x33   :  { %vm422_vm15 = vc.u32 %v414_v30, %v418_v38  ;;  %v377_v57 = vsel %vm373_vm11, %v361_v51, %v376_v56  ;;  %v398_v58 = vshll.u32 %v394_v47, 16  ;;  %v424_v54 = vadd.s32 %v418_v38, %v414_v30 }
  0x34   :  { %v125_v52 = vshrl.u32 %v124_v44, 30  ;;  %v396_v55 = vshll.u32 %v393_v45, 16  ;;  %v423_v59 = vsel %vm422_vm15, 1, %v1393_v42  ;;  %vm664_vm1 = vcmp.gt.s32.totalorder %v663_v43, 0 }
  0x35   :  { %v419_v5 = vshrl.u32 %v415_v32, 16  ;;  %v425_v7 = vadd.s32 %v423_v59, %v417_v49  ;;  %vm426_vm2 = vc.u32 %v424_v54, %v420_v50  ;;  %v397_v10 = vshrl.u32 %v393_v45, 16 }
  0x36   :  { %v126_v62 = vshll.u32 %v125_v52, 30  ;;  %vm400_vm0 = vc.u32 %v392_v21, %v396_v55  ;;  %v402_v4 = vadd.s32 %v396_v55, %v392_v21  ;;  %v399_v12 = vshrl.u32 %v394_v47, 16 }
  0x37   :  { %v401_v41 = vsel %vm400_vm0, 1, %v1393_v42  ;;  %v421_v14 = vshrl.u32 %v416_v37, 16  ;;  %v427_v15 = vsel %vm426_vm2, 1, %v1393_v42  ;;  %v378_v23 = vsel %vm372_vm12, %v375_v46, %v377_v57 }
  0x38   :  { %v127_v48 = vsub.s32 %v123_v34, %v126_v62  ;;  %v403_v11 = vadd.s32 %v401_v41, %v395_v53  ;;  %vm404_vm3 = vc.u32 %v402_v4, %v398_v58  ;;  %v429_v18 = vadd.s32 %v427_v15, %v425_v7 }
  0x39   :  { %v405_v51 = vsel %vm404_vm3, 1, %v1393_v42  ;;  %v665_v19 = vsel %vm664_vm1, %v663_v43, 0  ;;  %v1543_v24 = vadd.s32 %v424_v54, %v420_v50  ;;  %v660_v30 = vand.u32 8388607, %v653_v39 }
  0x3a   :  { %vm128_vm4 = vcmp.lt.s32.totalorder %v127_v48, 0  ;;  %v129_v16 = vsub.s32 0, %v127_v48  ;;  %v407_v17 = vadd.s32 %v405_v51, %v403_v11  ;;  %v430_v26 = vadd.s32 %v429_v18, %v419_v5 }
  0x3b   :  { %v667_v32 = vand.u32 31, %v665_v19  ;;  %v432_v35 = vmul.u32 %v1455_v60, %v378_v23  ;;  %v149_v36 = vsub.s32 4, %v125_v52  ;;  %vm27_vm6 = vcmp.lt.s32.totalorder %v1410_v0, 0 }
  0x3c   :  { %v130_v20 = vsel %vm128_vm4, %v129_v16, %v127_v48  ;;  %v408_v22 = vadd.s32 %v407_v17, %v397_v10  ;;  %v431_v28 = vadd.s32 %v430_v26, %v421_v14  ;;  %v119_v37 = vadd.s32 %v1495_v63, %v1500_v9 }
  0x3d   :  { %v131_v13 = vclz %v130_v20  ;;  %v661_v44 = vor.u32 8388608, %v660_v30  ;;  %v668_v56 = vsub.s32 32, %v667_v32  ;;  %v150_v60 = vsel %vm27_vm6, %v149_v36, %v125_v52 }
  0x3e   :  { %v409_v61 = vadd.s32 %v408_v22, %v399_v12  ;;  %v435_v2 = vadd.s32 1, %v431_v28  ;;  %v1554_v49 = vshrl.u32 %v665_v19, 5  ;;  %v670_v50 = vshll.u32 %v1387_v25, %v667_v32 }
  0x3f   :  { %v1300_v34 = vadd.s32 4294967294, %v131_v13  ;;  %v673_v53 = vshll.u32 %v1388_v27, %v667_v32  ;;  %v676_v9 = vshll.u32 %v1389_v29, %v667_v32  ;;  %v679_v57 = vshll.u32 %v1390_v31, %v667_v32 }
  0x40   :  { %vm434_vm5 = vc.u32 %v409_v61, %v1543_v24  ;;  %v671_v59 = vshrl.u32 %v1388_v27, %v668_v56  ;;  %v674_v54 = vshrl.u32 %v1389_v29, %v668_v56  ;;  %v680_v62 = vshrl.u32 %v1391_v33, %v668_v56 }
  0x41   :  { %vm1301_vm7 = vcmp.lt.s32.totalorder %v1300_v34, 0  ;;  %v436_v43 = vsel %vm434_vm5, %v435_v2, %v431_v28  ;;  %v677_v41 = vshrl.u32 %v1390_v31, %v668_v56  ;;  %v682_v5 = vshll.u32 %v1391_v33, %v667_v32 }
  0x42   :  { %v134_v38 = vsel %vm1301_vm7, 0, %v1300_v34  ;;  %v437_v47 = vadd.s32 %v436_v43, %v432_v35  ;;  %vm1567_vm8 = vcmp.le.f32.partialorder %v25_v1, 0.7853982  ;;  %v683_v10 = vshrl.u32 %v1392_v40, %v668_v56 }
  0x43   :  { %v135_v21 = vsub.s32 32, %v134_v38  ;;  %v136_v45 = vshll.u32 %v127_v48, %v134_v38  ;;  %v139_v46 = vsub.s32 4294967266, %v134_v38  ;;  %v1573_v11 = vmul.f32 8.0, %v1410_v0 }
  0x44   :  { %v438_v58 = vadd.s32 536870912, %v437_v47  ;;  %v152_v14 = vsel %vm1567_vm8, 0, %v150_v60  ;;  %v681_v15 = vor.u32 %v680_v62, %v679_v57  ;;  %v672_v17 = vor.u32 %v671_v59, %v670_v50 }
  0x45   :  { %v137_v55 = vshrl.u32 %v119_v37, %v135_v21  ;;  %v140_v63 = vadd.s32 127, %v139_v46  ;;  %v675_v18 = vor.u32 %v674_v54, %v673_v53  ;;  %v1577_v23 = vshll.u32 %v661_v44, 8 }
  0x46   :  { %v439_v48 = vshrl.u32 %v438_v58, 30  ;;  %v678_v19 = vor.u32 %v677_v41, %v676_v9  ;;  %v684_v20 = vor.u32 %v683_v10, %v682_v5  ;;  %vm688_vm9 = vcmp.lt.s32.totalorder %v1554_v49, 4 }
  0x47   :  { %v138_v52 = vor.u32 %v137_v55, %v136_v45  ;;  %v141_v4 = vshll.u32 %v140_v63, 23  ;;  %vm341_vm10 = vcmp.lt.s32.totalorder %v1416_v3, 0  ;;  %v669_v26 = vshrl.u32 %v1387_v25, %v668_v56 }
  0x48   :  { %v440_v16 = vshll.u32 %v439_v48, 30  ;;  %vm685_vm11 = vcmp.lt.s32.totalorder %v1554_v49, 1  ;;  %v970_v13 = vand.u32 2139095040, %v1573_v11  ;;  %v169_v30 = vadd.s32 3, %v152_v14 }
  0x49   :  { %v142_v12 = vor.u32 4788187, %v141_v4  ;;  %v145_v51 = vcvt.s32.f32 %v138_v52  ;;  %vm687_vm12 = vcmp.lt.s32.totalorder %v1554_v49, 3  ;;  %v694_v32 = vsel %vm688_vm9, %v681_v15, 920167782 }
  0x4a   :  { %v1581_v22 = vsub.s32 %v437_v47, %v440_v16  ;;  %v433_v34 = vadd.s32 %v1543_v24, %v409_v61  ;;  %vm686_vm14 = vcmp.lt.s32.totalorder %v1554_v49, 2  ;;  %v693_v2 = vsel %vm685_vm11, %v672_v17, %v675_v18 }
  0x4b   :  { %v143_v1 = vand.u32 2147483647, %v142_v12  ;;  %v697_v37 = vsel %vm685_vm11, %v675_v18, %v678_v19  ;;  %v698_v38 = vsel %vm688_vm9, %v684_v20, 1326507024  ;;  %v695_v24 = vsel %vm687_vm12, %v678_v19, %v694_v32 }
  0x4c   :  { %vm442_vm13 = vcmp.lt.s32.totalorder %v1581_v22, 0  ;;  %v443_v35 = vsub.s32 0, %v1581_v22  ;;  %v699_v61 = vsel %vm687_vm12, %v681_v15, %v698_v38  ;;  %v702_v44 = vand.u32 65535, %v1577_v23 }
  0x4d   :  { %v146_v28 = vmul.f32 %v145_v51, %v143_v1  ;;  %vm1609_vm15 = vcmp.le.f32.partialorder %v339_v6, 0.7853982  ;;  %v463_v46 = vsub.s32 4, %v439_v48  ;;  %v700_v47 = vsel %vm686_vm14, %v697_v37, %v699_v61 }
  0x4e   :  { %v444_v43 = vsel %vm442_vm13, %v443_v35, %v1581_v22  ;;  %v1620_v50 = vand.u32 3, %v169_v30  ;;  %v1622_v53 = vand.u32 3, %v152_v14  ;;  %v705_v55 = vshrl.u32 %v700_v47, 16 }
  0x4f   :  { %v147_v36 = vxor.u32 2147483648, %v146_v28  ;;  %v445_v45 = vclz %v444_v43  ;;  %v690_v9 = vsel %vm688_vm9, %v678_v19, 2102212464  ;;  %v696_v57 = vsel %vm686_vm14, %v693_v2, %v695_v24 }
  0x50   :  { %v689_v58 = vsel %vm685_vm11, %v669_v26, %v672_v17  ;;  %v703_v59 = vshrl.u32 %v1577_v23, 16  ;;  %v704_v54 = vand.u32 65535, %v700_v47  ;;  %v1633_v62 = vmul.u32 %v705_v55, %v702_v44 }
  0x51   :  { %v148_v56 = vsel %vm27_vm6, %v147_v36, %v146_v28  ;;  %v1306_v63 = vadd.s32 4294967294, %v445_v45  ;;  %v464_v41 = vsel %vm341_vm10, %v463_v46, %v439_v48  ;;  %v691_v7 = vsel %vm687_vm12, %v675_v18, %v690_v9 }
  0x52   :  { %v1618_v60 = vsel %vm1567_vm8, %v1410_v0, %v148_v56  ;;  %v726_v10 = vand.u32 65535, %v696_v57  ;;  %v727_v12 = vshrl.u32 %v696_v57, 16  ;;  %vm175_vm1 = vcmp.eq.s32.totalorder %v1620_v50, 2 }
  0x53   :  { %v153_v6 = vmul.f32 %v1618_v60, %v1618_v60  ;;  %vm1307_vm0 = vcmp.lt.s32.totalorder %v1306_v63, 0  ;;  %v706_v1 = vmul.u32 %v704_v54, %v702_v44  ;;  %v1641_v19 = vmul.u32 %v704_v54, %v703_v59 }
  0x54   :  { %v448_v5 = vsel %vm1307_vm0, 0, %v1306_v63  ;;  %v710_v20 = vshll.u32 %v1633_v62, 16  ;;  %vm331_vm2 = vcmp.eq.s32.totalorder %v1622_v53, 2  ;;  %vm172_vm3 = vcmp.eq.s32.totalorder %v1620_v50, 0 }
  0x55   :  { %v154_v52 = vmul.f32 -0.001358992, %v153_v6  ;;  %v161_v4 = vmul.f32 -0.00019511016, %v153_v6  ;;  %v449_v15 = vsub.s32 32, %v448_v5  ;;  %v450_v16 = vshll.u32 %v1581_v22, %v448_v5 }
  0x56   :  { %v453_v17 = vsub.s32 4294967266, %v448_v5  ;;  %vm328_vm4 = vcmp.eq.s32.totalorder %v1622_v53, 0  ;;  %v1649_v22 = vsel %vm1609_vm15, 0, %v464_v41  ;;  %v1653_v30 = vsel %vm686_vm14, %v689_v58, %v691_v7 }
  0x57   :  { %v155_v51 = vadd.f32 0.041655596, %v154_v52  ;;  %v162_v14 = vadd.f32 0.008332121, %v161_v4  ;;  %v451_v18 = vshrl.u32 %v433_v34, %v449_v15  ;;  %v709_v32 = vmul.u32 %v705_v55, %v703_v59 }
  0x58   :  { %v454_v28 = vadd.s32 127, %v453_v17  ;;  %vm171_vm5 = vcmp.lt.s32.totalorder %v1620_v50, 2  ;;  %vm327_vm6 = vcmp.lt.s32.totalorder %v1622_v53, 2  ;;  %v729_v2 = vmul.u32 %v727_v12, %v702_v44 }
  0x59   :  { %v156_v48 = vmul.f32 %v155_v51, %v153_v6  ;;  %v163_v26 = vmul.f32 %v162_v14, %v153_v6  ;;  %v452_v34 = vor.u32 %v451_v18, %v450_v16  ;;  %vm168_vm7 = vweird.f32 %v1410_v0 }
  0x5a   :  { %v455_v37 = vshll.u32 %v454_v28, 23  ;;  %v712_v38 = vshll.u32 %v1641_v19, 16  ;;  %vm714_vm8 = vc.u32 %v706_v1, %v710_v20  ;;  %v730_v43 = vmul.u32 %v726_v10, %v703_v59 }
  0x5b   :  { %v157_v35 = vadd.f32 -0.4999988, %v156_v48  ;;  %v164_v36 = vadd.f32 -0.16666654, %v163_v26  ;;  %v715_v61 = vsel %vm714_vm8, 1, %v1393_v42  ;;  %v728_v56 = vmul.u32 %v726_v10, %v702_v44 }
  0x5c   :  { %v456_v45 = vor.u32 4788187, %v455_v37  ;;  %v459_v46 = vcvt.s32.f32 %v452_v34  ;;  %v716_v47 = vadd.s32 %v710_v20, %v706_v1  ;;  %v717_v55 = vadd.s32 %v715_v61, %v709_v32 }
  0x5d   :  { %v158_v24 = vmul.f32 %v157_v35, %v153_v6  ;;  %v165_v49 = vmul.f32 %v164_v36, %v153_v6  ;;  %v731_v57 = vmul.u32 %v727_v12, %v703_v59  ;;  %v732_v58 = vshll.u32 %v729_v2, 16 }
  0x5e   :  { %v457_v54 = vand.u32 2147483647, %v456_v45  ;;  %v711_v52 = vshrl.u32 %v1633_v62, 16  ;;  %vm718_vm9 = vc.u32 %v716_v47, %v712_v38  ;;  %v734_v4 = vshll.u32 %v730_v43, 16 }
  0x5f   :  { %v159_v63 = vadd.f32 1.0, %v158_v24  ;;  %v166_v9 = vadd.f32 1.0, %v165_v49  ;;  %v719_v6 = vsel %vm718_vm9, 1, %v1393_v42  ;;  %vm736_vm11 = vc.u32 %v728_v56, %v732_v58 }
  0x60   :  { %v460_v44 = vmul.f32 %v459_v46, %v457_v54  ;;  %v721_v7 = vadd.s32 %v719_v6, %v717_v55  ;;  %v737_v10 = vsel %vm736_vm11, 1, %v1393_v42  ;;  %v738_v51 = vadd.s32 %v732_v58, %v728_v56 }
  0x61   :  { %v167_v41 = vmul.f32 %v166_v9, %v1618_v60  ;;  %v176_v5 = vxor.u32 2147483648, %v159_v63  ;;  %v739_v12 = vadd.s32 %v737_v10, %v731_v57  ;;  %v713_v60 = vshrl.u32 %v1641_v19, 16 }
  0x62   :  { %v461_v15 = vxor.u32 2147483648, %v460_v44  ;;  %v722_v16 = vadd.s32 %v721_v7, %v711_v52  ;;  %vm740_vm12 = vc.u32 %v738_v51, %v734_v4  ;;  %v733_v20 = vshrl.u32 %v729_v2, 16 }
  0x63   :  { %v173_v14 = vxor.u32 2147483648, %v167_v41  ;;  %v177_v59 = vsel %vm175_vm1, %v176_v5, %v167_v41  ;;  %v333_v62 = vsel %vm331_vm2, %v176_v5, %v167_v41  ;;  %v741_v48 = vsel %vm740_vm12, 1, %v1393_v42 }
  0x64   :  { %v462_v19 = vsel %vm341_vm10, %v461_v15, %v460_v44  ;;  %v735_v28 = vshrl.u32 %v730_v43, 16  ;;  %v743_v34 = vadd.s32 %v741_v48, %v739_v12  ;;  %v1687_v2 = vadd.s32 %v722_v16, %v713_v60 }
  0x65   :  { %v174_v17 = vsel %vm172_vm3, %v159_v63, %v173_v14  ;;  %v330_v1 = vsel %vm328_vm4, %v159_v63, %v173_v14  ;;  %v465_v36 = vsel %vm1609_vm15, %v1416_v3, %v462_v19  ;;  %v1689_v53 = vadd.s32 %v738_v51, %v734_v4 }
  0x66   :  { %v178_v26 = vsel %vm171_vm5, %v174_v17, %v177_v59  ;;  %v334_v18 = vsel %vm327_vm6, %v330_v1, %v333_v62  ;;  %v467_v50 = vmul.f32 %v465_v36, %v465_v36  ;;  %v971_v37 = vshrl.u32 %v970_v13, 23 }
  0x67   :  { %v179_v32 = vsel %vm168_vm7, nan, %v178_v26  ;;  %v335_v35 = vsel %vm168_vm7, nan, %v334_v18  ;;  %v483_v38 = vadd.s32 3, %v1649_v22  ;;  %v744_v43 = vadd.s32 %v743_v34, %v733_v20 }
  0x68   :  { %181 = vst [vmem:[#allocation5 + $0x1] sm:$0x1] %v179_v32  ;;  %v468_v0 = vmul.f32 -0.001358992, %v467_v50  ;;  %v475_v24 = vmul.f32 -0.00019511016, %v467_v50  ;;  %v746_v21 = vmul.u32 %v1577_v23, %v1653_v30  ;;  %vm748_vm10 = vc.u32 %v1687_v2, %v1689_v53 }
  0x69   :  { %337 = vst [vmem:[#allocation5 + $0x2] sm:$0x1] %v335_v35  ;;  %v1317_v49 = vadd.s32 4294967169, %v971_v37  ;;  %v745_v61 = vadd.s32 %v744_v43, %v735_v28  ;;  %v967_v56 = vand.u32 2147483647, %v1573_v11  ;;  %v484_v13 = vand.u32 3, %v483_v38 }
  0x6a   :  { %v469_v45 = vadd.f32 0.041655596, %v468_v0  ;;  %v476_v46 = vadd.f32 0.008332121, %v475_v24  ;;  %v640_v57 = vand.u32 3, %v1649_v22  ;;  %vm482_vm14 = vweird.f32 %v1416_v3 }
  0x6b   :  { %v977_v47 = vadd.s32 1, %v1317_v49  ;;  %v749_v55 = vadd.s32 1, %v745_v61  ;;  %v974_v30 = vand.u32 8388607, %v967_v56  ;;  %vm485_vm15 = vcmp.lt.s32.totalorder %v484_v13, 2 }
  0x6c   :  { %v470_v63 = vmul.f32 %v469_v45, %v467_v50  ;;  %v477_v9 = vmul.f32 %v476_v46, %v467_v50  ;;  %vm486_vm0 = vcmp.eq.s32.totalorder %v484_v13, 0  ;;  %vm489_vm1 = vcmp.eq.s32.totalorder %v484_v13, 2 }
  0x6d   :  { %vm978_vm13 = vcmp.gt.s32.totalorder %v977_v47, 0  ;;  %v750_v58 = vsel %vm748_vm10, %v749_v55, %v745_v61  ;;  %vm641_vm2 = vcmp.lt.s32.totalorder %v640_v57, 2  ;;  %vm642_vm3 = vcmp.eq.s32.totalorder %v640_v57, 0 }
  0x6e   :  { %v979_v54 = vsel %vm978_vm13, %v977_v47, 0  ;;  %v471_v52 = vadd.f32 -0.4999988, %v470_v63  ;;  %v478_v4 = vadd.f32 -0.16666654, %v477_v9  ;;  %v751_v23 = vadd.s32 %v750_v58, %v746_v21 }
  0x6f   :  { %v981_v41 = vand.u32 31, %v979_v54  ;;  %vm645_vm4 = vcmp.eq.s32.totalorder %v640_v57, 2  ;;  %v975_v59 = vor.u32 8388608, %v974_v30  ;;  %v1715_v20 = vshrl.u32 %v979_v54, 5 }
  0x70   :  { %v472_v5 = vmul.f32 %v471_v52, %v467_v50  ;;  %v479_v6 = vmul.f32 %v478_v4, %v467_v50  ;;  %v752_v44 = vadd.s32 536870912, %v751_v23  ;;  %v747_v9 = vadd.s32 %v1689_v53, %v1687_v2 }
  0x71   :  { %v1703_v22 = vsub.s32 32, %v981_v41  ;;  %v984_v7 = vshll.u32 %v1387_v25, %v981_v41  ;;  %v987_v12 = vshll.u32 %v1388_v27, %v981_v41  ;;  %v993_v60 = vshll.u32 %v1390_v31, %v981_v41 }
  0x72   :  { %v473_v10 = vadd.f32 1.0, %v472_v5  ;;  %v480_v51 = vadd.f32 1.0, %v479_v6  ;;  %v1706_v14 = vshrl.u32 %v752_v44, 30  ;;  %v990_v26 = vshll.u32 %v1389_v29, %v981_v41 }
  0x73   :  { %v985_v62 = vshrl.u32 %v1388_v27, %v1703_v22  ;;  %v988_v15 = vshrl.u32 %v1389_v29, %v1703_v22  ;;  %v991_v18 = vshrl.u32 %v1390_v31, %v1703_v22  ;;  %v994_v27 = vshrl.u32 %v1391_v33, %v1703_v22 }
  0x74   :  { %v481_v16 = vmul.f32 %v480_v51, %v465_v36  ;;  %v490_v17 = vxor.u32 2147483648, %v473_v10  ;;  %v754_v1 = vshll.u32 %v1706_v14, 30  ;;  %v996_v50 = vshll.u32 %v1391_v33, %v981_v41 }
  0x75   :  { %v1717_v48 = vor.u32 %v985_v62, %v984_v7  ;;  %v1726_v36 = vor.u32 %v988_v15, %v987_v12  ;;  %v995_v34 = vor.u32 %v994_v27, %v993_v60  ;;  %v997_v29 = vshrl.u32 %v1392_v40, %v1703_v22 }
  0x76   :  { %v487_v19 = vxor.u32 2147483648, %v481_v16  ;;  %v491_v28 = vsel %vm489_vm1, %v490_v17, %v481_v16  ;;  %v647_v32 = vsel %vm645_vm4, %v490_v17, %v481_v16  ;;  %v755_v35 = vsub.s32 %v751_v23, %v754_v1 }
  0x77   :  { %v992_v24 = vor.u32 %v991_v18, %v990_v26  ;;  %v998_v49 = vor.u32 %v997_v29, %v996_v50  ;;  %vm999_vm6 = vcmp.lt.s32.totalorder %v1715_v20, 1  ;;  %vm1001_vm7 = vcmp.lt.s32.totalorder %v1715_v20, 3 }
  0x78   :  { %v488_v37 = vsel %vm486_vm0, %v473_v10, %v487_v19  ;;  %v644_v31 = vsel %vm642_vm3, %v473_v10, %v487_v19  ;;  %vm756_vm5 = vcmp.lt.s32.totalorder %v755_v35, 0  ;;  %v757_v38 = vsub.s32 0, %v755_v35 }
  0x79   :  { %v492_v43 = vsel %vm485_vm15, %v488_v37, %v491_v28  ;;  %v648_v0 = vsel %vm641_vm2, %v644_v31, %v647_v32  ;;  %vm1002_vm8 = vcmp.lt.s32.totalorder %v1715_v20, 4  ;;  %vm1000_vm9 = vcmp.lt.s32.totalorder %v1715_v20, 2 }
  0x7a   :  { %v493_v61 = vsel %vm482_vm14, nan, %v492_v43  ;;  %v649_v33 = vsel %vm482_vm14, nan, %v648_v0  ;;  %v758_v21 = vsel %vm756_vm5, %v757_v38, %v755_v35  ;;  %v1007_v45 = vsel %vm999_vm6, %v1717_v48, %v1726_v36 }
  0x7b   :  { %495 = vst [vmem:[#allocation5 + $0x3] sm:$0x1] %v493_v61  ;;  %v759_v40 = vclz %v758_v21  ;;  %v1008_v3 = vsel %vm1002_vm8, %v995_v34, 920167782  ;;  %v1011_v13 = vsel %vm999_vm6, %v1726_v36, %v992_v24  ;;  %v1012_v55 = vsel %vm1002_vm8, %v998_v49, 1326507024 }
  0x7c   :  { %651 = vst [vmem:[#allocation5 + $0x4] sm:$0x1] %v649_v33  ;;  %v1009_v47 = vsel %vm1001_vm7, %v992_v24, %v1008_v3  ;;  %v1756_v63 = vshll.u32 %v975_v59, 8  ;;  %v1013_v58 = vsel %vm1001_vm7, %v995_v34, %v1012_v55  ;;  %v983_v7 = vshrl.u32 %v1387_v25, %v1703_v22 }
  0x7d   :  { %v1312_v46 = vadd.s32 4294967294, %v759_v40  ;;  %v1010_v57 = vsel %vm1000_vm9, %v1007_v45, %v1009_v47  ;;  %v1014_v52 = vsel %vm1000_vm9, %v1011_v13, %v1013_v58  ;;  %vm655_vm12 = vcmp.lt.s32.totalorder %v1423_v8, 0 }
  0x7e   :  { %v1017_v4 = vshrl.u32 %v1756_v63, 16  ;;  %v1040_v23 = vand.u32 65535, %v1010_v57  ;;  %v1018_v6 = vand.u32 65535, %v1014_v52  ;;  %v1016_v2 = vand.u32 65535, %v1756_v63 }
  0x7f   :  { %vm1313_vm11 = vcmp.lt.s32.totalorder %v1312_v46, 0  ;;  %v1019_v10 = vshrl.u32 %v1014_v52, 16  ;;  %v1041_v59 = vshrl.u32 %v1010_v57, 16  ;;  %vm1773_vm10 = vcmp.le.f32.partialorder %v653_v39, 0.7853982 }
  0x80   :  { %v762_v54 = vsel %vm1313_vm11, 0, %v1312_v46  ;;  %v1022_v51 = vmul.u32 %v1018_v6, %v1017_v4  ;;  %v1044_v15 = vmul.u32 %v1040_v23, %v1017_v4  ;;  %v777_v16 = vsub.s32 4, %v1706_v14 }
  0x81   :  { %v763_v30 = vsub.s32 32, %v762_v54  ;;  %v764_v41 = vshll.u32 %v755_v35, %v762_v54  ;;  %v767_v5 = vsub.s32 4294967266, %v762_v54  ;;  %v1020_v17 = vmul.u32 %v1018_v6, %v1016_v2 }
  0x82   :  { %v1021_v1 = vmul.u32 %v1019_v10, %v1016_v2  ;;  %v1042_v22 = vmul.u32 %v1040_v23, %v1016_v2  ;;  %v1043_v18 = vmul.u32 %v1041_v59, %v1016_v2  ;;  %v1003_v27 = vsel %vm999_vm6, %v983_v7, %v1717_v48 }
  0x83   :  { %v765_v53 = vshrl.u32 %v747_v9, %v763_v30  ;;  %v768_v44 = vadd.s32 127, %v767_v5  ;;  %v1023_v19 = vmul.u32 %v1019_v10, %v1017_v4  ;;  %v1026_v32 = vshll.u32 %v1022_v51, 16 }
  0x84   :  { %v1024_v28 = vshll.u32 %v1021_v1, 16  ;;  %v1045_v39 = vmul.u32 %v1041_v59, %v1017_v4  ;;  %v1046_v34 = vshll.u32 %v1043_v18, 16  ;;  %v1048_v50 = vshll.u32 %v1044_v15, 16 }
  0x85   :  { %v766_v62 = vor.u32 %v765_v53, %v764_v41  ;;  %v769_v12 = vshll.u32 %v768_v44, 23  ;;  %v1004_v29 = vsel %vm1002_vm8, %v992_v24, 2102212464  ;;  %v1025_v37 = vshrl.u32 %v1021_v1, 16 }
  0x86   :  { %vm1028_vm13 = vc.u32 %v1020_v17, %v1024_v28  ;;  %v1030_v31 = vadd.s32 %v1024_v28, %v1020_v17  ;;  %vm1050_vm14 = vc.u32 %v1042_v22, %v1046_v34  ;;  %v1052_v0 = vadd.s32 %v1046_v34, %v1042_v22 }
  0x87   :  { %v770_v26 = vor.u32 4788187, %v769_v12  ;;  %v773_v25 = vcvt.s32.f32 %v766_v62  ;;  %v1029_v43 = vsel %vm1028_vm13, 1, %v1393_v42  ;;  %v1047_v48 = vshrl.u32 %v1043_v18, 16 }
  0x88   :  { %v1031_v49 = vadd.s32 %v1029_v43, %v1023_v19  ;;  %vm1032_vm15 = vc.u32 %v1030_v31, %v1026_v32  ;;  %v1051_v61 = vsel %vm1050_vm14, 1, %v1393_v42  ;;  %vm1054_vm0 = vc.u32 %v1052_v0, %v1048_v50 }
  0x89   :  { %v771_v35 = vand.u32 2147483647, %v770_v26  ;;  %v1033_v21 = vsel %vm1032_vm15, 1, %v1393_v42  ;;  %v1053_v40 = vadd.s32 %v1051_v61, %v1045_v39  ;;  %v1005_v24 = vsel %vm1001_vm7, %v1726_v36, %v1004_v29 }
  0x8a   :  { %v1027_v45 = vshrl.u32 %v1022_v51, 16  ;;  %v1035_v3 = vadd.s32 %v1033_v21, %v1031_v49  ;;  %v1055_v46 = vsel %vm1054_vm0, 1, %v1393_v42  ;;  %v1049_v13 = vshrl.u32 %v1044_v15, 16 }
  0x8b   :  { %v774_v38 = vmul.f32 %v773_v25, %v771_v35  ;;  %v1057_v55 = vadd.s32 %v1055_v46, %v1053_v40  ;;  %v778_v9 = vsel %vm655_vm12, %v777_v16, %v1706_v14  ;;  %v1056_v54 = vadd.s32 %v1052_v0, %v1048_v50 }
  0x8c   :  { %v1036_v58 = vadd.s32 %v1035_v3, %v1025_v37  ;;  %v1006_v52 = vsel %vm1000_vm9, %v1003_v27, %v1005_v24  ;;  %v780_v23 = vsel %vm1773_vm10, 0, %v778_v9  ;;  %vm796_vm8 = vweird.f32 %v1423_v8 }
  0x8d   :  { %v775_v33 = vxor.u32 2147483648, %v774_v38  ;;  %v1058_v42 = vadd.s32 %v1057_v55, %v1047_v48  ;;  %v1060_v14 = vmul.u32 %v1756_v63, %v1006_v52  ;;  %v797_v44 = vadd.s32 3, %v780_v23 }
  0x8e   :  { %v1037_v4 = vadd.s32 %v1036_v58, %v1027_v45  ;;  %v954_v15 = vand.u32 3, %v780_v23 }
  0x8f   :  { %v776_v47 = vsel %vm655_vm12, %v775_v33, %v774_v38  ;;  %v1059_v5 = vadd.s32 %v1058_v42, %v1049_v13  ;;  %v798_v12 = vand.u32 3, %v797_v44  ;;  %vm969_vm12 = vcmp.lt.s32.totalorder %v1573_v11, 0 }
  0x90   :  { %v779_v57 = vsel %vm1773_vm10, %v1423_v8, %v776_v47  ;;  %vm1062_vm1 = vc.u32 %v1037_v4, %v1056_v54  ;;  %vm959_vm3 = vcmp.eq.s32.totalorder %v954_v15, 2  ;;  %vm956_vm6 = vcmp.eq.s32.totalorder %v954_v15, 0 }
  0x91   :  { %v781_v36 = vmul.f32 %v779_v57, %v779_v57  ;;  %v1063_v53 = vadd.s32 1, %v1059_v5  ;;  %vm803_vm2 = vcmp.eq.s32.totalorder %v798_v12, 2  ;;  %vm799_vm4 = vcmp.lt.s32.totalorder %v798_v12, 2 }
  0x92   :  { %vm800_vm5 = vcmp.eq.s32.totalorder %v798_v12, 0  ;;  %vm955_vm7 = vcmp.lt.s32.totalorder %v954_v15, 2  ;;  %v1061_v49 = vadd.s32 %v1056_v54, %v1037_v4  ;;  %vm968_vm10 = vcmp.le.f32.partialorder %v967_v56, 0.7853982 }
  0x93   :  { %v782_v30 = vmul.f32 -0.001358992, %v781_v36  ;;  %v789_v41 = vmul.f32 -0.00019511016, %v781_v36  ;;  %v1064_v51 = vsel %vm1062_vm1, %v1063_v53, %v1059_v5 }
  0x94   :  { %v1065_v20 = vadd.s32 %v1064_v51, %v1060_v14 }
  0x95   :  { %v783_v6 = vadd.f32 0.041655596, %v782_v30  ;;  %v790_v2 = vadd.f32 0.008332121, %v789_v41 }
  0x96   :  { %v1066_v60 = vadd.s32 536870912, %v1065_v20 }
  0x97   :  { %v784_v7 = vmul.f32 %v783_v6, %v781_v36  ;;  %v791_v10 = vmul.f32 %v790_v2, %v781_v36 }
  0x98   :  { %v1067_v1 = vshrl.u32 %v1066_v60, 30 }
  0x99   :  { %v785_v59 = vadd.f32 -0.4999988, %v784_v7  ;;  %v792_v62 = vadd.f32 -0.16666654, %v791_v10 }
  0x9a   :  { %v1068_v63 = vshll.u32 %v1067_v1, 30  ;;  %v1091_v55 = vsub.s32 4, %v1067_v1 }
  0x9b   :  { %v786_v16 = vmul.f32 %v785_v59, %v781_v36  ;;  %v793_v17 = vmul.f32 %v792_v62, %v781_v36 }
  0x9c   :  { %v1069_v27 = vsub.s32 %v1065_v20, %v1068_v63  ;;  %v1092_v58 = vsel %vm969_vm12, %v1091_v55, %v1067_v1 }
  0x9d   :  { %v787_v26 = vadd.f32 1.0, %v786_v16  ;;  %v794_v25 = vadd.f32 1.0, %v793_v17  ;;  %v1094_v52 = vsel %vm968_vm10, 0, %v1092_v58 }
  0x9e   :  { %vm1070_vm9 = vcmp.lt.s32.totalorder %v1069_v27, 0  ;;  %v1071_v35 = vsub.s32 0, %v1069_v27  ;;  %v1111_v41 = vadd.s32 3, %v1094_v52  ;;  %v1268_v44 = vand.u32 3, %v1094_v52 }
  0x9f   :  { %v795_v22 = vmul.f32 %v794_v25, %v779_v57  ;;  %v804_v18 = vxor.u32 2147483648, %v787_v26 }
  0xa0   :  { %v1072_v37 = vsel %vm1070_vm9, %v1071_v35, %v1069_v27  ;;  %v1112_v53 = vand.u32 3, %v1111_v41  ;;  %vm1273_vm14 = vcmp.eq.s32.totalorder %v1268_v44, 2  ;;  %vm1270_vm1 = vcmp.eq.s32.totalorder %v1268_v44, 0 }
  0xa1   :  { %v801_v19 = vxor.u32 2147483648, %v795_v22  ;;  %v805_v28 = vsel %vm803_vm2, %v804_v18, %v795_v22  ;;  %v961_v32 = vsel %vm959_vm3, %v804_v18, %v795_v22  ;;  %v1073_v43 = vclz %v1072_v37 }
  0xa2   :  { %vm1117_vm13 = vcmp.eq.s32.totalorder %v1112_v53, 2  ;;  %vm1113_vm15 = vcmp.lt.s32.totalorder %v1112_v53, 2  ;;  %vm1114_vm0 = vcmp.eq.s32.totalorder %v1112_v53, 0  ;;  %vm1269_vm2 = vcmp.lt.s32.totalorder %v1268_v44, 2 }
  0xa3   :  { %v802_v39 = vsel %vm800_vm5, %v787_v26, %v801_v19  ;;  %v958_v34 = vsel %vm956_vm6, %v787_v26, %v801_v19  ;;  %v1318_v0 = vadd.s32 4294967294, %v1073_v43  ;;  %vm1110_vm3 = vweird.f32 %v1573_v11 }
  0xa4   :  { %v806_v50 = vsel %vm799_vm4, %v802_v39, %v805_v28  ;;  %v962_v29 = vsel %vm955_vm7, %v958_v34, %v961_v32 }
  0xa5   :  { %v807_v31 = vsel %vm796_vm8, nan, %v806_v50  ;;  %v963_v38 = vsel %vm796_vm8, nan, %v962_v29  ;;  %vm1319_vm11 = vcmp.lt.s32.totalorder %v1318_v0, 0 }
  0xa6   :  { %809 = vst [vmem:[#allocation5 + $0x5] sm:$0x1] %v807_v31  ;;  %v1076_v48 = vsel %vm1319_vm11, 0, %v1318_v0 }
  0xa7   :  { %965 = vst [vmem:[#allocation5 + $0x6] sm:$0x1] %v963_v38  ;;  %v1077_v61 = vsub.s32 32, %v1076_v48  ;;  %v1078_v33 = vshll.u32 %v1069_v27, %v1076_v48  ;;  %v1081_v21 = vsub.s32 4294967266, %v1076_v48 }
  0xa9   :  { %v1079_v8 = vshrl.u32 %v1061_v49, %v1077_v61  ;;  %v1082_v40 = vadd.s32 127, %v1081_v21 }
  0xab   :  { %v1080_v24 = vor.u32 %v1079_v8, %v1078_v33  ;;  %v1083_v45 = vshll.u32 %v1082_v40, 23 }
  0xad   :  { %v1084_v3 = vor.u32 4788187, %v1083_v45  ;;  %v1087_v46 = vcvt.s32.f32 %v1080_v24 }
  0xaf   :  { %v1085_v47 = vand.u32 2147483647, %v1084_v3 }
  0xb1   :  { %v1088_v13 = vmul.f32 %v1087_v46, %v1085_v47 }
  0xb3   :  { %v1089_v9 = vxor.u32 2147483648, %v1088_v13 }
  0xb5   :  { %v1090_v57 = vsel %vm969_vm12, %v1089_v9, %v1088_v13 }
  0xb6   :  { %v1093_v54 = vsel %vm968_vm10, %v1573_v11, %v1090_v57 }
  0xb7   :  { %v1095_v36 = vmul.f32 %v1093_v54, %v1093_v54 }
  0xb9   :  { %v1096_v42 = vmul.f32 -0.001358992, %v1095_v36  ;;  %v1103_v4 = vmul.f32 -0.00019511016, %v1095_v36 }
  0xbb   :  { %v1097_v23 = vadd.f32 0.041655596, %v1096_v42  ;;  %v1104_v30 = vadd.f32 0.008332121, %v1103_v4 }
  0xbd   :  { %v1098_v5 = vmul.f32 %v1097_v23, %v1095_v36  ;;  %v1105_v14 = vmul.f32 %v1104_v30, %v1095_v36 }
  0xbf   :  { %v1099_v6 = vadd.f32 -0.4999988, %v1098_v5  ;;  %v1106_v2 = vadd.f32 -0.16666654, %v1105_v14 }
  0xc1   :  { %v1100_v7 = vmul.f32 %v1099_v6, %v1095_v36  ;;  %v1107_v56 = vmul.f32 %v1106_v2, %v1095_v36 }
  0xc3   :  { %v1101_v10 = vadd.f32 1.0, %v1100_v7  ;;  %v1108_v51 = vadd.f32 1.0, %v1107_v56 }
  0xc5   :  { %v1109_v20 = vmul.f32 %v1108_v51, %v1093_v54  ;;  %v1118_v59 = vxor.u32 2147483648, %v1101_v10 }
  0xc7   :  { %v1115_v62 = vxor.u32 2147483648, %v1109_v20  ;;  %v1119_v12 = vsel %vm1117_vm13, %v1118_v59, %v1109_v20  ;;  %v1275_v15 = vsel %vm1273_vm14, %v1118_v59, %v1109_v20 }
  0xc9   :  { %v1116_v60 = vsel %vm1114_vm0, %v1101_v10, %v1115_v62  ;;  %v1272_v16 = vsel %vm1270_vm1, %v1101_v10, %v1115_v62 }
  0xca   :  { %v1120_v17 = vsel %vm1113_vm15, %v1116_v60, %v1119_v12  ;;  %v1276_v1 = vsel %vm1269_vm2, %v1272_v16, %v1275_v15 }
  0xcb   :  { %v1121_v26 = vsel %vm1110_vm3, nan, %v1120_v17  ;;  %v1277_v25 = vsel %vm1110_vm3, nan, %v1276_v1 }
  0xcc   :  { %1123 = vst [vmem:[#allocation5 + $0x7] sm:$0x1] %v1121_v26 }
  0xcd   :  { %1279 = vst [vmem:[#allocation5 + $0x8] sm:$0x1] %v1277_v25 }
  0xce   :  { %1292 = dma.vmem_to_hbm [thread:$0]  %s1285_s11, 144, %s1287_s14, [#allocation4], %s1395_s15, %s1395_s15, %s1396_s16  }
  0xcf   :  { %1384 = dma.done.wait [#allocation4], 144  }
  0xd0   :  { %1385 = vsyncadd [#allocation4], 4294967152 }
  0xd1   :  { %1297 = vsyncpa [#allocation3], 1 }
  0xd2   :  { %1298 = vsyncpa [#allocation4], 1 }

</bundles_post_ra>
